<compile_context>
chip_gen: v6e
topology: v6e:2x2x1
jax: 0.10.0
libtpu: 0.0.40
codegen_flags: <defaults>
</compile_context>

<pallas_src>
import math
from functools import partial

import jax
import jax.numpy as jnp
from jax.experimental import pallas as pl
from jax.experimental.pallas import tpu as pltpu


# ----------------------------------------------------------------------------- kernel
def _inference_kernel(x_ref, sel_ref, w_ref, b_ref, out_ref, acc_ref):
    ri = pl.program_id(1)

    @pl.when(ri == 0)
    def _():
        acc_ref[...] = jnp.zeros_like(acc_ref)

    # Streaming per-lane sum of the RAW input tile.  All affine preprocessing is folded
    # into w_ref/b_ref.  uint8 inputs accumulate in int32 (acc dtype), f32 inputs in f32.
    acc_ref[...] += jnp.sum(x_ref[...].astype(acc_ref.dtype), axis=1)   # [TB, LW]

    @pl.when(ri == pl.num_programs(1) - 1)
    def _():
        # Once-per-batch-block epilogue: lane->channel fold on the idle MXU, folded head,
        # softmax.  Cost is negligible next to the streaming reduction above.
        lane_sums = acc_ref[...].astype(jnp.float32)                    # [TB, LW]
        ch_sums = jnp.dot(lane_sums, sel_ref[...],
                          preferred_element_type=jnp.float32)           # [TB, C]
        logits = jnp.dot(ch_sums, w_ref[...],
                         preferred_element_type=jnp.float32) + b_ref[...]  # [TB, NC]
        m = jnp.max(logits, axis=-1, keepdims=True)
        e = jnp.exp(logits - m)
        probs = e / jnp.sum(e, axis=-1, keepdims=True)
        out_ref[...] = probs.reshape(out_ref.shape)


# ---------------------------------------------------------------------------- tiling
def _choose_tiling(hwc, c, itemsize, max_lane_width, max_row_tile):
    """Pick (lane_width, rows, row_tile) for the flat NHWC layout [B, rows, lane_width]."""
    base = (128 * c) // math.gcd(128, c)      # lcm(128, C): lane width must be a multiple
    if hwc % base != 0:                       # of 128 (lanes) and of C (channel period).
        raise ValueError(f"H*W*C={hwc} must be a multiple of lcm(128, C)={base}")
    lw = base
    k = 2
    while k * base <= max_lane_width:
        if hwc % (k * base) == 0:
            lw = k * base
        k += 1
    r = hwc // lw
    pack = max(1, 32 // itemsize)             # sublane packing: 8 (f32), 16 (bf16), 32 (u8)
    if r <= max_row_tile:
        tr = r                                # full second-to-last dim: always legal
    else:
        tr = None
        m = pack
        while m <= max_row_tile:
            if r % m == 0:
                tr = m
            m += pack
        if tr is None:
            tr = r                            # TODO(synk): remainder grid for awkward r
    return lw, r, tr


def _choose_batch_tile(batch, tr, lw, itemsize, max_block_bytes):
    """Largest divisor of `batch` (<=16) whose input block stays under max_block_bytes."""
    tb = 1
    for cand in range(2, min(batch, 16) + 1):
        if batch % cand == 0 and cand * tr * lw * itemsize <= max_block_bytes:
            tb = cand
    return tb


# --------------------------------------------------------------------------- wrapper
@partial(jax.jit, static_argnames=("scale_inp", "channels_first", "max_lane_width",
                                   "max_row_tile", "max_block_bytes"))
def inference_wrapper_forward(x_nhwc, normalize_mean, normalize_std, w, b, *,
                              scale_inp=True, channels_first=True,
                              max_lane_width=2048, max_row_tile=512,
                              max_block_bytes=4 * 1024 * 1024):
    """x_nhwc: [B, H, W, C] (float32 in [0,255] or uint8). Returns softmax probs [B, NC]."""
    assert channels_first, "kernel implements the NHWC-input (channels_first=True) path"
    B, H, W_, C = x_nhwc.shape
    NC = w.shape[1]
    HW = H * W_
    HWC = HW * C
    itemsize = jnp.dtype(x_nhwc.dtype).itemsize

    lw, r, tr = _choose_tiling(HWC, C, itemsize, max_lane_width, max_row_tile)
    tb = _choose_batch_tile(B, tr, lw, itemsize, max_block_bytes)

    # Fold /255 (if scale_inp), -mean, /std and 1/HW into the linear head (tiny, jit-fused).
    mean = normalize_mean.astype(jnp.float32).reshape(C)
    std = normalize_std.astype(jnp.float32).reshape(C)
    scale = 255.0 if scale_inp else 1.0
    w_f32 = w.astype(jnp.float32)
    w_fold = w_f32 / (scale * HW * std)[:, None]                       # [C, NC]
    b_fold = (b.astype(jnp.float32) - (mean / std) @ w_f32).reshape(1, NC)

    # Lane l of a length-lw row holds channel (l % C): tiny 0/1 lane->channel selector so
    # the epilogue does   (lane_sums @ sel) @ w_fold + b_fold   (no [lw, NC] weight tile).
    sel = (jnp.arange(lw, dtype=jnp.int32)[:, None] % C ==
           jnp.arange(C, dtype=jnp.int32)[None, :]).astype(jnp.float32)  # [lw, C]

    # NHWC consumed directly: [B, H, W, C] -> [B, r, lw] is a free (contiguous) reshape.
    x = x_nhwc.reshape(B, r, lw)
    acc_dtype = jnp.int32 if jnp.issubdtype(x_nhwc.dtype, jnp.integer) else jnp.float32

    grid = (B // tb, r // tr)
    out = pl.pallas_call(
        _inference_kernel,
        out_shape=jax.ShapeDtypeStruct((B, 1, NC), jnp.float32),
        grid=grid,
        in_specs=[
            pl.BlockSpec((tb, tr, lw), lambda bi, ri: (bi, ri, 0)),    # streamed raw input
            pl.BlockSpec((lw, C), lambda bi, ri: (0, 0)),              # lane->channel selector
            pl.BlockSpec((C, NC), lambda bi, ri: (0, 0)),              # folded weights (tiny)
            pl.BlockSpec((1, NC), lambda bi, ri: (0, 0)),              # folded bias
        ],
        out_specs=pl.BlockSpec((tb, 1, NC), lambda bi, ri: (bi, 0, 0)),
        scratch_shapes=[pltpu.VMEM((tb, lw), acc_dtype)],              # per-lane sum acc
        compiler_params=pltpu.CompilerParams(
            dimension_semantics=("parallel", "arbitrary"),             # batch across TCs
            vmem_limit_bytes=48 * 1024 * 1024),                        # > 16/32 MiB scoped
    )(x, sel, w_fold, b_fold)
    return out.reshape(B, NC)


# ------------------------------------------------------------------------- reference
def _reference_forward(x_nhwc, mean, std, w, b, scale_inp=True):
    """Pure-JAX reference mirroring the PyTorch semantics (NCHW path)."""
    x = x_nhwc.astype(jnp.float32)
    if scale_inp:
        x = x / 255.0
    x = jnp.transpose(x, (0, 3, 1, 2))                                 # NHWC -> NCHW
    x = (x - mean.reshape(1, -1, 1, 1)) / std.reshape(1, -1, 1, 1)
    pooled = jnp.mean(x, axis=(2, 3))                                  # [B, C]
    logits = pooled @ w + b                                            # [B, NC]
    return jax.nn.softmax(logits, axis=1)


if __name__ == "__main__":
    B, H, W, C = 2, 32, 32, 4
    NC = 8

    key = jax.random.PRNGKey(0)
    kx, kw, kb, kx2 = jax.random.split(key, 4)

    x = jax.random.uniform(kx, (B, H, W, C), dtype=jnp.float32) * 255.0
    normalize_mean = jnp.array([0.485, 0.456, 0.406, 0.500], dtype=jnp.float32)
    normalize_std = jnp.array([0.229, 0.224, 0.225, 0.250], dtype=jnp.float32)
    w = jax.random.normal(kw, (C, NC), dtype=jnp.float32) * 0.1
    b = jax.random.normal(kb, (NC,), dtype=jnp.float32) * 0.01

    # 1) float32 path; small caps force a (1, 4) grid with TB=2 to exercise the
    #    zero / accumulate / epilogue phases of the pipelined batch-blocked reduction.
    out = inference_wrapper_forward(x, normalize_mean, normalize_std, w, b,
                                    max_lane_width=128, max_row_tile=8)
    out = jax.block_until_ready(out)
    ref = _reference_forward(x, normalize_mean, normalize_std, w, b)
    assert out.shape == (B, NC)
    assert jnp.allclose(jnp.sum(out, axis=1), 1.0, atol=1e-5)
    assert jnp.allclose(out, ref, atol=2e-5, rtol=1e-4), float(jnp.max(jnp.abs(out - ref)))

    # 2) uint8 path (4x less HBM traffic; /255 folded into weights; int32 accumulator).
    x_u8 = jnp.round(x).astype(jnp.uint8)
    out_u8 = jax.block_until_ready(
        inference_wrapper_forward(x_u8, normalize_mean, normalize_std, w, b))
    ref_u8 = _reference_forward(x_u8.astype(jnp.float32), normalize_mean, normalize_std, w, b)
    assert jnp.allclose(out_u8, ref_u8, atol=2e-5, rtol=1e-4)

    # 3) multi-block batch grid (TB < B) to exercise accumulator re-init across batch blocks.
    x4 = jax.random.uniform(kx2, (4, 16, 16, C), dtype=jnp.float32) * 255.0
    out4 = jax.block_until_ready(
        inference_wrapper_forward(x4, normalize_mean, normalize_std, w, b,
                                  max_lane_width=128, max_row_tile=8,
                                  max_block_bytes=8 * 1024))
    ref4 = _reference_forward(x4, normalize_mean, normalize_std, w, b)
    assert jnp.allclose(out4, ref4, atol=2e-5, rtol=1e-4)

    print("KERNEL_OK")
</pallas_src>

<mosaic_0001>
module attributes {stable_mosaic.version = 11 : i64} {
  func.func @_inference_kernel(%arg0: i32, %arg1: i32, %arg2: memref<2x8x128xf32, #tpu.memory_space<vmem>>, %arg3: memref<128x4xf32, #tpu.memory_space<vmem>>, %arg4: memref<4x8xf32, #tpu.memory_space<vmem>>, %arg5: memref<1x8xf32, #tpu.memory_space<vmem>>, %arg6: memref<2x1x8xf32, #tpu.memory_space<vmem>>, %arg7: memref<2x128xf32, #tpu.memory_space<vmem>>) attributes {dimension_semantics = [#tpu.dimension_semantics<parallel>, #tpu.dimension_semantics<arbitrary>], iteration_bounds = array<i64: 1, 4>, scalar_prefetch = 0 : i64, scratch_operands = 1 : i64, tpu.core_type = #tpu.core_type<tc>, window_params = [{transform_indices = @transform_0, window_bounds = array<i64: 2, 8, 128>}, {pipeline_mode = #tpu.pipeline_mode<synchronous>, transform_indices = @transform_1, window_bounds = array<i64: 128, 4>}, {pipeline_mode = #tpu.pipeline_mode<synchronous>, transform_indices = @transform_2, window_bounds = array<i64: 4, 8>}, {pipeline_mode = #tpu.pipeline_mode<synchronous>, transform_indices = @transform_3, window_bounds = array<i64: 1, 8>}, {transform_indices = @transform_4, window_bounds = array<i64: 2, 1, 8>}]} {
    %c0_i32 = arith.constant 0 : i32
    %0 = arith.cmpi eq, %arg1, %c0_i32 : i32
    %1 = arith.extui %0 : i1 to i32
    %c0_i32_0 = arith.constant 0 : i32
    %2 = arith.cmpi ne, %1, %c0_i32_0 : i32
    scf.if %2 {
      %cst_8 = arith.constant 0.000000e+00 : f32
      %11 = vector.broadcast %cst_8 : f32 to vector<2x128xf32>
      %c0_9 = arith.constant 0 : index
      %c0_10 = arith.constant 0 : index
      %12 = vector.load %arg7[%c0_9, %c0_10] : memref<2x128xf32, #tpu.memory_space<vmem>>, vector<2x128xf32>
      tpu.vector_store %arg7[%c0_9, %c0_10], %11 {strides = array<i32>} : memref<2x128xf32, #tpu.memory_space<vmem>>, vector<2x128xf32>,
    } else {
    }
    %c0 = arith.constant 0 : index
    %c0_1 = arith.constant 0 : index
    %3 = vector.load %arg7[%c0, %c0_1] : memref<2x128xf32, #tpu.memory_space<vmem>>, vector<2x128xf32>
    %c0_2 = arith.constant 0 : index
    %c0_3 = arith.constant 0 : index
    %c0_4 = arith.constant 0 : index
    %4 = vector.load %arg2[%c0_2, %c0_3, %c0_4] : memref<2x8x128xf32, #tpu.memory_space<vmem>>, vector<2x8x128xf32>
    %cst = arith.constant dense<0.000000e+00> : vector<2x128xf32>
    %5 = vector.multi_reduction <add>, %4, %cst [1] : vector<2x8x128xf32> to vector<2x128xf32>
    %6 = arith.addf %3, %5 : vector<2x128xf32>
    %c0_5 = arith.constant 0 : index
    %c0_6 = arith.constant 0 : index
    %7 = vector.load %arg7[%c0_5, %c0_6] : memref<2x128xf32, #tpu.memory_space<vmem>>, vector<2x128xf32>
    tpu.vector_store %arg7[%c0_5, %c0_6], %6 {strides = array<i32>} : memref<2x128xf32, #tpu.memory_space<vmem>>, vector<2x128xf32>,
    %c3_i32 = arith.constant 3 : i32
    %8 = arith.cmpi eq, %arg1, %c3_i32 : i32
    %9 = arith.extui %8 : i1 to i32
    %c0_i32_7 = arith.constant 0 : i32
    %10 = arith.cmpi ne, %9, %c0_i32_7 : i32
    scf.if %10 {
      %c0_8 = arith.constant 0 : index
      %c0_9 = arith.constant 0 : index
      %11 = vector.load %arg7[%c0_8, %c0_9] : memref<2x128xf32, #tpu.memory_space<vmem>>, vector<2x128xf32>
      %c0_10 = arith.constant 0 : index
      %c0_11 = arith.constant 0 : index
      %12 = vector.load %arg3[%c0_10, %c0_11] : memref<128x4xf32, #tpu.memory_space<vmem>>, vector<128x4xf32>
      %cst_12 = arith.constant dense<0.000000e+00> : vector<2x4xf32>
      %13 = tpu.matmul %11, %12, %cst_12 {dimension_numbers = #tpu.dot_dimension_numbers<[1], [0], [0], [1], [0, 0, 1, 1], [], []>} : vector<2x128xf32>, vector<128x4xf32>, vector<2x4xf32> -> vector<2x4xf32>
      %c0_13 = arith.constant 0 : index
      %c0_14 = arith.constant 0 : index
      %14 = vector.load %arg4[%c0_13, %c0_14] : memref<4x8xf32, #tpu.memory_space<vmem>>, vector<4x8xf32>
      %cst_15 = arith.constant dense<0.000000e+00> : vector<2x8xf32>
      %15 = tpu.matmul %13, %14, %cst_15 {dimension_numbers = #tpu.dot_dimension_numbers<[1], [0], [0], [1], [0, 0, 1, 1], [], []>} : vector<2x4xf32>, vector<4x8xf32>, vector<2x8xf32> -> vector<2x8xf32>
      %c0_16 = arith.constant 0 : index
      %c0_17 = arith.constant 0 : index
      %16 = vector.load %arg5[%c0_16, %c0_17] : memref<1x8xf32, #tpu.memory_space<vmem>>, vector<1x8xf32>
      %17 = vector.broadcast %16 : vector<1x8xf32> to vector<2x8xf32>
      %18 = arith.addf %15, %17 : vector<2x8xf32>
      %cst_18 = arith.constant dense<0xFF800000> : vector<2xf32>
      %19 = vector.multi_reduction <maximumf>, %18, %cst_18 [1] : vector<2x8xf32> to vector<2xf32>
      %20 = vector.shape_cast %19 : vector<2xf32> to vector<2x1xf32>
      %21 = vector.broadcast %20 : vector<2x1xf32> to vector<2x8xf32>
      %22 = arith.subf %18, %21 : vector<2x8xf32>
      %23 = math.exp %22 : vector<2x8xf32>
      %cst_19 = arith.constant dense<0.000000e+00> : vector<2xf32>
      %24 = vector.multi_reduction <add>, %23, %cst_19 [1] : vector<2x8xf32> to vector<2xf32>
      %25 = vector.shape_cast %24 : vector<2xf32> to vector<2x1xf32>
      %26 = vector.broadcast %25 : vector<2x1xf32> to vector<2x8xf32>
      %27 = arith.divf %23, %26 : vector<2x8xf32>
      %28 = vector.shape_cast %27 : vector<2x8xf32> to vector<2x1x8xf32>
      %c0_20 = arith.constant 0 : index
      %c0_21 = arith.constant 0 : index
      %c0_22 = arith.constant 0 : index
      %29 = vector.load %arg6[%c0_20, %c0_21, %c0_22] : memref<2x1x8xf32, #tpu.memory_space<vmem>>, vector<2x1x8xf32>
      tpu.vector_store %arg6[%c0_20, %c0_21, %c0_22], %28 {strides = array<i32>} : memref<2x1x8xf32, #tpu.memory_space<vmem>>, vector<2x1x8xf32>,
    } else {
    }
    return
  }
  func.func @transform_0(%arg0: i32, %arg1: i32) -> (i32, i32, i32) {
    %c0_i32 = arith.constant 0 : i32
    %c0_i32_0 = arith.constant 0 : i32
    return %arg0, %arg1, %c0_i32 : i32, i32, i32
  }
  func.func @transform_1(%arg0: i32, %arg1: i32) -> (i32, i32) {
    %c0_i32 = arith.constant 0 : i32
    %c0_i32_0 = arith.constant 0 : i32
    %c0_i32_1 = arith.constant 0 : i32
    return %c0_i32, %c0_i32_0 : i32, i32
  }
  func.func @transform_2(%arg0: i32, %arg1: i32) -> (i32, i32) {
    %c0_i32 = arith.constant 0 : i32
    %c0_i32_0 = arith.constant 0 : i32
    %c0_i32_1 = arith.constant 0 : i32
    return %c0_i32, %c0_i32_0 : i32, i32
  }
  func.func @transform_3(%arg0: i32, %arg1: i32) -> (i32, i32) {
    %c0_i32 = arith.constant 0 : i32
    %c0_i32_0 = arith.constant 0 : i32
    %c0_i32_1 = arith.constant 0 : i32
    return %c0_i32, %c0_i32_0 : i32, i32
  }
  func.func @transform_4(%arg0: i32, %arg1: i32) -> (i32, i32, i32) {
    %c0_i32 = arith.constant 0 : i32
    %c0_i32_0 = arith.constant 0 : i32
    %c0_i32_1 = arith.constant 0 : i32
    return %arg0, %c0_i32, %c0_i32_0 : i32, i32, i32
  }
}

</mosaic_0001>

<bundles_post_ra>
// kernel: inference_wrapper_forward.1
= control target key start
LH: loop header
LB: loop body
LE: loop exit
PB: predicated region body
PF: predicated region fallthrough
CT: control target
= control target key end

     0   :  { %9 = vsyncpa [#allocation5], 0  ;;  %s793_s15 = smov 0   ;;  %s795_s16 = smov 0   ;;  %s928_s0 = inlined_call_operand.vmem [shape: f32[2,32,128], index: 0, kind: input, shape index: {}]   ;;  %s929_s1 = inlined_call_operand.vmem [shape: f32[128,4], index: 1, kind: input, shape index: {}]   ;;  %s930_s2 = inlined_call_operand.vmem [shape: f32[4,8], index: 2, kind: input, shape index: {}]   ;;  %s931_s3 = inlined_call_operand.vmem [shape: f32[1,8], index: 3, kind: input, shape index: {}]   ;;  %s932_s4 = inlined_call_operand.hbm [shape: f32[2,1,8], index: 4, kind: output, shape index: {}]  }
   0x1   :  { %s797_s17 = smov 0   ;;  %s799_s18 = smov 0  }
   0x2   :  { %s801_s19 = smov 0  }
   0x3 LB: > { %s561_s20 = sadd.s32 4294967295, %s759_s19   ;;  %s24_s21 = sadd.s32 1, %s755_s18  ;;  %s759_s19 = sphi %s801_s19, %s15_s19   ;;  %s755_s18 = sphi %s799_s18, %s937_s18   ;;  %s751_s17 = sphi %s797_s17, %s936_s17   ;;  %s747_s16 = sphi %s795_s16, %s935_s16   ;;  %s743_s15 = sphi %s793_s15, %s934_s15  }
   0x4   : > { %p25_p0 = scmp.ge.s32.totalorder %s24_s21, 4  ;;  %p43_p1 = scmp.ne.s32.totalorder %s747_s16, %s743_s15 }
   0x5   : > { %p44_p2 = scmp.eq.s32.totalorder %s759_s19, 0  ;;  %s36_s23 = sadd.s32 1, %s747_s16 }
   0x6   : > { %s939_s21 = smov (%p25_p0, %s24_s21), 0  ;;  %p563_p5 = scmp.ge.s32.totalorder %s759_s19, 4 }
   0x7   : > { %p45_p3 = por %p44_p2, %p43_p1  ;;  %s32_s22 = ssub.s32 %s755_s18, %s939_s21 }
   0x8   : > { %p34_p4 = scmp.eq.s32.totalorder %s32_s22, 0  ;;  %167 = sbr.rel (%p563_p5) target bundleno = 19 (0x13), region = 28 }
   0xa   : > { %s829_s24 = scalar_select %p34_p4, %s747_s16, %s36_s23  }
   0xd   : > { %170 = sbr.rel (!%p45_p3) target bundleno = 19 (0x13), region = 32  ;;  %s172_s25 = sand.u32 (%p45_p3), 1, %s747_s16  }
   0xe   : > { %s565_s26 = sshll.u32 (%p45_p3), %s755_s18, 3  ;;  %s564_s27 = sshll.u32 (%p45_p3), %s172_s25, 4 }
   0xf   : > { %s179_s30 = scalar_lea.vmem (%p45_p3), %s928_s0, %s565_s26  ;;  %s174_s5 = scalar_lea.vmem (%p45_p3), [#allocation3], %s564_s27 }
  0x10   : > { %v210_v0 = vld [vmem:[%s179_s30] sm:$0xff] (%p45_p3) }
  0x11   : > { %v212_v1 = vld [vmem:[%s179_s30 + $0x20] sm:$0xff] (%p45_p3)  ;;  %211 = vst [vmem:[%s174_s5] sm:$0xff] (%p45_p3), %v210_v0 }
  0x12   : > { %213 = vst [vmem:[%s174_s5 + $0x8] sm:$0xff] %v212_v1 }
  0x13 PF: > { %p566_p6 = scmp.ge.s32.totalorder %s759_s19, 1  ;;  %p218_p7 = scmp.lt.s32.totalorder %s759_s19, 5 }
  0x15   : > { %p219_p8 = pnand %p566_p6, %p218_p7 }
  0x16   : > { %s225_s6 = sand.u32 (!%p219_p8), 1, %s743_s15   ;;  %p568_p9 = scmp.ne.s32.totalorder (!%p219_p8), %s751_s17, 0 }
  0x17   : > { %222 = sbr.rel (%p219_p8) target bundleno = 808 (0x328), region = 70  ;;  %s567_s7 = sshll.u32 (!%p219_p8), %s225_s6, 4 }
  0x18   : > { %s227_s8 = scalar_lea.vmem (!%p219_p8), [#allocation3], %s567_s7 }
  0x1c   : > { %250 = sbr.rel (%p568_p9) target bundleno = 35 (0x23), region = 78 }
  0x21   : > { %v761_v2 = vmov 0.0  }
  0x22   : > { %251 = vst [vmem:[#allocation2] sm:$0x3] %v761_v2 }
  0x23 PF: > { %v253_v3 = vld [vmem:[%s227_s8] sm:$0xff]  ;;  %v254_v4 = vld [vmem:[%s227_s8 + $0x8] sm:$0xff]  ;;  %vm269_vm0 = vcmask 1041409   ;;  %p569_p10 = scmp.ne.s32.totalorder %s751_s17, 3 }
  0x24   : > { %v255_v5 = vrot.slane %v253_v3, 4  ;;  %v261_v6 = vrot.slane %v254_v4, 4 }
  0x26   : > { %v256_v7 = vadd.f32 %v255_v5, %v253_v3  ;;  %v262_v8 = vadd.f32 %v261_v6, %v254_v4 }
  0x28   : > { %v257_v9 = vrot.slane %v256_v7, 2  ;;  %v263_v10 = vrot.slane %v262_v8, 2 }
  0x29   : > { %v252_v15 = vld [vmem:[#allocation2] sm:$0x3] }
  0x2a   : > { %v258_v11 = vadd.f32 %v257_v9, %v256_v7  ;;  %v264_v12 = vadd.f32 %v263_v10, %v262_v8 }
  0x2c   : > { %v259_v13 = vrot.slane %v258_v11, 1  ;;  %v265_v14 = vrot.slane %v264_v12, 1 }
  0x2e   : > { %v260_v16 = vadd.f32 %v259_v13, %v258_v11  ;;  %v266_v17 = vadd.f32 %v265_v14, %v264_v12 }
  0x2f   : > { %277 = sbr.rel (%p569_p10) target bundleno = 792 (0x318), region = 82 }
  0x30   : > { %v270_v18 = vsel %vm269_vm0, %v266_v17, %v260_v16 }
  0x31   : > { %v272_v19 = vadd.f32 %v270_v18, %v252_v15 }
  0x33   : > { %273 = vst [vmem:[#allocation2] sm:$0x3] %v272_v19 }
  0x34   : > { %v294_v20 = vld [vmem:[%s929_s1 + $0x78] sm:$0xff]  ;;  %v762_v21 = vmov 0.0   ;;  %v293_v22 = vld [vmem:[%s929_s1 + $0x70] sm:$0xff]  ;;  %vm763_vm1 = vmmov 0   ;;  %v292_v23 = vld [vmem:[%s929_s1 + $0x68] sm:$0xff]  ;;  %vm377_vm2 = vcmask 1043456   ;;  %v467_v54 = vlaneseq }
  0x35   : > { %596 = vmatprep.subr.mxu0 %v762_v21  ;;  %628 = vmatprep.mubr.msk.f32.mxu0 %vm763_vm1, %v762_v21  ;;  %v291_v24 = vld [vmem:[%s929_s1 + $0x60] sm:$0xff]  ;;  %v290_v25 = vld [vmem:[%s929_s1 + $0x58] sm:$0xff]  ;;  %v289_v26 = vld [vmem:[%s929_s1 + $0x50] sm:$0xff]  ;;  %vm373_vm3 = vcmask 31744   ;;  %vm451_vm4 = vcmask 58368   ;;  %vm488_vm5 = vcmask 57344  }
  0x36   : > { %597 = vmatpush3.msra.mxu0 %v294_v20  ;;  %631 = vmatprep.subr.mxu1 %v762_v21  ;;  %v288_v27 = vld [vmem:[%s929_s1 + $0x48] sm:$0xff]  ;;  %v287_v28 = vld [vmem:[%s929_s1 + $0x40] sm:$0xff]  ;;  %v286_v29 = vld [vmem:[%s929_s1 + $0x38] sm:$0xff]  ;;  %v764_v52 = vmov 1966171168   ;;  %v468_v56 = vshrl.u32 %v467_v54, 7 }
  0x37   : > { %598 = vmatprep.subr.mxu0 %v762_v21  ;;  %633 = vmatprep.mubr.msk.f32.mxu1 %vm763_vm1, %v762_v21  ;;  %v285_v30 = vld [vmem:[%s929_s1 + $0x30] sm:$0xff]  ;;  %v284_v31 = vld [vmem:[%s929_s1 + $0x28] sm:$0xff]  ;;  %v283_v32 = vld [vmem:[%s929_s1 + $0x20] sm:$0xff]  ;;  %v465_v53 = vunpack.c.l.s4 %v764_v52 }
  0x38   : > { %599 = vmatpush3.msra.mxu0 %v293_v22  ;;  %v282_v33 = vld [vmem:[%s929_s1 + $0x18] sm:$0xff]  ;;  %v281_v34 = vld [vmem:[%s929_s1 + $0x10] sm:$0xff]  ;;  %v280_v35 = vld [vmem:[%s929_s1 + $0x8] sm:$0xff] }
  0x39   : > { %600 = vmatprep.subr.mxu0 %v762_v21  ;;  %v279_v36 = vld [vmem:[%s929_s1] sm:$0xff]  ;;  %v466_v55 = vunpack.c.0.s8 %v465_v53 }
  0x3a   : > { %601 = vmatpush3.msra.mxu0 %v292_v23  ;;  %v278_v37 = vld [vmem:[#allocation2] sm:$0x3] }
  0x3b   : > { %602 = vmatprep.subr.mxu0 %v762_v21  ;;  %v365_v38 = vld [vmem:[%s930_s2] sm:$0xf]  ;;  %v469_v57 = vsub.s32 %v466_v55, %v468_v56 }
  0x3c   : > { %603 = vmatpush3.msra.mxu0 %v291_v24  ;;  %632 = vmatpush3.msk.msra.mxu1 %vm377_vm2, %v365_v38  ;;  %v570_v41 = vld [vmem:[%s931_s3] ss:$0 sm:$0xff] }
  0x3d   : > { %604 = vmatprep.subr.mxu0 %v762_v21 }
  0x3e   : > { %605 = vmatpush3.msra.mxu0 %v290_v25 }
  0x3f   : > { %606 = vmatprep.subr.mxu0 %v762_v21 }
  0x40   : > { %607 = vmatpush3.msra.mxu0 %v289_v26 }
  0x41   : > { %608 = vmatprep.subr.mxu0 %v762_v21 }
  0x42   : > { %609 = vmatpush3.msra.mxu0 %v288_v27 }
  0x43   : > { %610 = vmatprep.subr.mxu0 %v762_v21 }
  0x44   : > { %611 = vmatpush3.msra.mxu0 %v287_v28 }
  0x45   : > { %612 = vmatprep.subr.mxu0 %v762_v21 }
  0x46   : > { %613 = vmatpush3.msra.mxu0 %v286_v29 }
  0x47   : > { %614 = vmatprep.subr.mxu0 %v762_v21 }
  0x48   : > { %615 = vmatpush3.msra.mxu0 %v285_v30 }
  0x49   : > { %616 = vmatprep.subr.mxu0 %v762_v21 }
  0x4a   : > { %617 = vmatpush3.msra.mxu0 %v284_v31 }
  0x4b   : > { %618 = vmatprep.subr.mxu0 %v762_v21 }
  0x4c   : > { %619 = vmatpush3.msra.mxu0 %v283_v32 }
  0x4d   : > { %620 = vmatprep.subr.mxu0 %v762_v21 }
  0x4e   : > { %621 = vmatpush3.msra.mxu0 %v282_v33 }
  0x4f   : > { %622 = vmatprep.subr.mxu0 %v762_v21 }
  0x50   : > { %623 = vmatpush3.msra.mxu0 %v281_v34 }
  0x51   : > { %624 = vmatprep.subr.mxu0 %v762_v21 }
  0x52   : > { %625 = vmatpush3.msra.mxu0 %v280_v35 }
  0x53   : > { %626 = vmatprep.subr.mxu0 %v762_v21 }
  0x54   : > { %627 = vmatpush3.msra.mxu0 %v279_v36 }
  0x55   : > { %629 = vmatmul.mubr.f32.vlgmr.msra.gmra.mxu0 %v278_v37 }
 0x115   : > { %v361_v39 = vpop.f32.mrf.mxu0 }
 0x116   : > { %634 = vmatmul.mubr.msk.f32.vlgmr.msra.gmra.mxu1 %vm373_vm3, %v361_v39 }
 0x117   : > { %v630_v40 = vpop.f32.mrf.mxu0 }
 0x1d6   : > { %v447_v42 = vpop.f32.mrf.mxu1 }
 0x1d7   : > { %v448_v43 = vadd.f32 %v570_v41, %v447_v42 }
 0x1d8   : > { %v635_v44 = vpop.f32.mrf.mxu1 }
 0x1d9   : > { %v452_v45 = vsel %vm451_vm4, %v448_v43, -inf }
 0x1da   : > { %453 = vmax.xlane.f32.xlu0 %v452_v45 }
 0x263   : > { %v454_v46 = vpop.xlane.xlu0 %453 }
 0x264   : > { %v455_v47 = vsub.f32 %v448_v43, %v454_v46 }
 0x266   : > { %v456_v48 = vmul.f32 1.442695, %v455_v47 }
 0x268   : > { %689 = vpow2.f32 %v456_v48 }
 0x275   : > { %v690_v49 = vpop.eup %689 }
 0x276   : > { %v458_v50 = vsel %vm451_vm4, %v690_v49, 0.0 }
 0x277   : > { %459 = vadd.xlane.f32.xlu0 %v458_v50 }
 0x300   : > { %v460_v51 = vpop.xlane.xlu0 %459 }
 0x301   : > { %691 = vrcp.f32 %v460_v51 }
 0x30e   : > { %v692_v58 = vpop.eup %691 }
 0x30f   : > { %v462_v59 = vmul.f32 %v692_v58, %v690_v49 }
 0x311   : > { %v470_v60 = vrot.slane %v462_v59, %v469_v57 }
 0x313   : > { %v471_v61 = vcombine.high %v470_v60, %v470_v60  ;;  %v478_v62 = vrot.slane %v470_v60, %v469_v57 }
 0x315   : > { %v485_v63 = vrot.slane %v471_v61, %v469_v57  ;;  %489 = vst.msk [vmem:[#allocation4] sm:$0x1] %vm488_vm5, %v478_v62 }
 0x317   : > { %490 = vst.msk [vmem:[#allocation4 + $0x1] sm:$0x1] %vm488_vm5, %v485_v63 }
 0x318 PF: > { %p898_p11 = scmp.eq.s32.totalorder %s561_s20, 3  ;;  %s765_s6 = smov [#allocation4]  }
 0x319   : > { %s500_s7 = sshll.u32 %s765_s6, 4  ;;  %s501_s7 = int_to_ptr.vmem [resolvable:$true] %s500_s7 }
 0x31a   : > { %s693_s8 = scalar_lea.vmem %s501_s7, 32  ;;  %p700_p1 = scmp.lt.s32.totalorder %s501_s7, %s501_s7 }
 0x31b   : > { %p694_p12 = scmp.ne.s32.totalorder %s501_s7, %s693_s8  ;;  %p701_p2 = scmp.lt.s32.totalorder %s693_s8, %s693_s8 }
 0x31d   : > { %p695_p13 = pnand %p694_p12, %p898_p11  ;;  %p702_p3 = por %p701_p2, %p700_p1 }
 0x31f   : > { %p696_p0 = pneg %p695_p13 }
 0x321   : > { %p703_p4 = pnand %p702_p3, %p696_p0 }
 0x323   : > { %706 = shalt.err (!%p703_p4)
}
 0x324   : > { %s766_s9 = smov 16   ;;  %s767_s20 = smov 1  }
 0x325   : > { %637 = dma.vmem_to_hbm [thread:$0]  (%p898_p11), %s501_s7, 32, %s932_s4, [#allocation5], %s766_s9, %s766_s9, %s767_s20  }
 0x326   : > { %738 = dma.done.wait (%p898_p11), [#allocation5], 32  }
 0x327   : > { %740 = vsyncadd (%p898_p11), [#allocation5], 4294967264 }
 0x328 PF: > { %s15_s19 = sadd.s32 1, %s759_s19   ;;  %s934_s15 = smov %s747_s16 }
 0x329   : > { %p12_p5 = scmp.ge.s32.totalorder %s15_s19, 6   ;;  %s935_s16 = smov %s829_s24 }
 0x32a   : > { %s936_s17 = smov %s755_s18  ;;  %s937_s18 = smov %s939_s21 }
 0x32b   :  { %14 = sbr.rel (!%p12_p5) target bundleno = 3 (0x3), region = 115 }
 0x330   :  { %516 = vsyncpa [#allocation5], 1 }
 0x331   :  { %518 = vsyncpa [#allocation5 + $0x1], 1 }

</bundles_post_ra>
